<compile_context>
chip_gen: v5e
topology: v5e:2x2
jax: 0.10.0
libtpu: 0.0.40
codegen_flags: <defaults>
</compile_context>

<pallas_src>
import functools

import jax
import jax.numpy as jnp
from jax import lax
from jax.experimental import pallas as pl
from jax.experimental.pallas import tpu as pltpu


def _round_up(n, m):
    return ((n + m - 1) // m) * m


def _lif_step(cur, mem_prev, beta, thr=1.0):
    """snntorch Leaky, reset_mechanism='subtract': reset from mem_prev, spike from mem_new."""
    reset_sub = jnp.where(mem_prev > thr, jnp.float32(thr), jnp.float32(0.0))
    mem_new = beta * mem_prev + cur - reset_sub
    spk = (mem_new > thr).astype(jnp.float32)
    return spk, mem_new


def snn_ac_kernel(
    xmem_ref,   # (B, COLS)      [ x (padded to in_pad) | mem1 | mem2 | mem_crit | mem_act | 0 ]
    wb_ref,     # (rows_pad, W_COLS) [ W1 | W2 | Wc | Wa ], bias row at sublane index `in_pad`
    out_ref,    # (B, COLS)      [ value | action | 0 | mem1 | mem2 | mem_crit | mem_act | 0 ]
                #   mem fields at the SAME column offsets as xmem_ref (output can be fed back).
    *, num_steps, beta, in_pad, hidden, action, chunk, use_bf16_matmul,
):
    H = hidden
    A = action
    NH = 1 + A                      # fused head width: [critic | actor]
    B = xmem_ref.shape[0]
    f32 = jnp.float32

    slab = xmem_ref[...]
    x_pad = slab[:, 0:in_pad]                                    # zeros beyond state_shape
    mem1_0 = slab[:, in_pad:in_pad + H]
    mem2_0 = slab[:, in_pad + H:in_pad + 2 * H]
    mem_heads_0 = slab[:, in_pad + 2 * H:in_pad + 2 * H + NH]    # [mem_crit | mem_act]

    wb = wb_ref[...]
    w1 = wb[0:in_pad, 0:H]                      # rows >= state_shape are zero
    w2 = wb[0:H, H:2 * H]
    w_heads = wb[0:H, 2 * H:2 * H + NH]         # fused [Wc | Wa]
    b_row = wb[in_pad:in_pad + 1, :]            # bias row folded into the weight slab

    # hoisted broadcasts (broadcast_in_dim is not CSE'd if left inside a loop)
    b1 = jnp.broadcast_to(b_row[:, 0:H], (B, H))
    b2_row = b_row[:, H:2 * H]                  # (1, H)
    b_heads = jnp.broadcast_to(b_row[:, 2 * H:2 * H + NH], (B, NH))

    mm_dtype = jnp.bfloat16 if use_bf16_matmul else f32
    w1_mm = w1.astype(mm_dtype)
    w2_mm = w2.astype(mm_dtype)
    wh_mm = w_heads.astype(mm_dtype)

    def _mm(a, b):
        return jnp.dot(a.astype(mm_dtype), b, preferred_element_type=f32)

    # Loop-invariant first-layer current: the PyTorch loop re-feeds the FULL input tensor every
    # step, so lin1(x) never changes -> one matmul serves the whole recurrence.
    cur1 = _mm(x_pad, w1_mm) + b1

    def run_chunk(carry, csize, b2_bcast):
        """csize LIF steps.  Layer-1 spikes depend only on the loop-invariant cur1, so they are
        precomputed with VPU-only arithmetic; all csize layer-2 matmuls are batched into one
        (csize*B, H) @ (H, H) MXU dot; layer-2 LIF then runs over the precomputed currents."""
        mem1_c, mem2_c, _ = carry
        spk1_list = []
        for _ in range(csize):                     # fully inlined (csize <= 32)
            spk1, mem1_c = _lif_step(cur1, mem1_c, beta)
            spk1_list.append(spk1)
        spk1_all = spk1_list[0] if csize == 1 else jnp.concatenate(spk1_list, axis=0)
        cur2_all = _mm(spk1_all, w2_mm) + b2_bcast
        spk2_c = None
        for t in range(csize):                     # static slices, VPU-only serial chain
            cur2_t = cur2_all[t * B:(t + 1) * B, :]
            spk2_c, mem2_c = _lif_step(cur2_t, mem2_c, beta)
        return (mem1_c, mem2_c, spk2_c)

    carry = (mem1_0, mem2_0, jnp.zeros((B, H), f32))
    n_full, rem = num_steps // chunk, num_steps % chunk
    if n_full > 0:
        b2_full = jnp.broadcast_to(b2_row, (chunk * B, H))
        if n_full == 1:
            carry = run_chunk(carry, chunk, b2_full)
        else:
            carry = lax.fori_loop(0, n_full,
                                  lambda i, c: run_chunk(c, chunk, b2_full), carry)
    if rem > 0:
        b2_rem = jnp.broadcast_to(b2_row, (rem * B, H))
        carry = run_chunk(carry, rem, b2_rem)
    mem1, mem2, spk2 = carry

    # fused critic+actor head: one MXU matmul, one LIF update.
    cur_heads = _mm(spk2, wh_mm) + b_heads
    spk_heads, mem_heads = _lif_step(cur_heads, mem_heads_0, beta)

    # static sub-slice stores (no concatenate/pad epilogue); layout mirrors the input slab.
    out_ref[:, 0:NH] = spk_heads                                   # [value | action]
    if in_pad > NH:
        out_ref[:, NH:in_pad] = jnp.zeros((B, in_pad - NH), f32)   # x region cleared
    out_ref[:, in_pad:in_pad + H] = mem1
    out_ref[:, in_pad + H:in_pad + 2 * H] = mem2
    out_ref[:, in_pad + 2 * H:in_pad + 2 * H + NH] = mem_heads
    used = in_pad + 2 * H + NH
    tail = out_ref.shape[1] - used
    if tail > 0:
        out_ref[:, used:used + tail] = jnp.zeros((B, tail), f32)


def pack_params(params):
    """Pack all weights + biases into one lane-padded slab.  Call ONCE at init; the per-call
    forward just passes the pre-packed slab (removes ~8 dynamic-update-slice HLOs per call)."""
    S, H = params["w1"].shape
    A = params["wa"].shape[1]
    NH = 1 + A
    in_pad = _round_up(max(S, H, NH), 8)
    W_COLS = _round_up(2 * H + NH, 128)
    ROWS = _round_up(in_pad + 1, 8)          # +1 row for the biases
    f32 = jnp.float32

    wb = jnp.zeros((ROWS, W_COLS), f32)
    wb = wb.at[:S, 0:H].set(params["w1"].astype(f32))
    wb = wb.at[:H, H:2 * H].set(params["w2"].astype(f32))
    wb = wb.at[:H, 2 * H:2 * H + 1].set(params["wc"].astype(f32))
    wb = wb.at[:H, 2 * H + 1:2 * H + NH].set(params["wa"].astype(f32))
    b_row = jnp.concatenate(
        [params["b1"].reshape(1, H).astype(f32),
         params["b2"].reshape(1, H).astype(f32),
         params["bc"].reshape(1, 1).astype(f32),
         params["ba"].reshape(1, A).astype(f32),
         jnp.zeros((1, W_COLS - (2 * H + NH)), f32)], axis=1)
    wb = wb.at[in_pad:in_pad + 1, :].set(b_row)

    dims = {"state": S, "hidden": H, "action": A, "in_pad": in_pad}
    return wb, dims


def snn_ac_forward(inputs, wb_slab, mems, *, dims, beta=0.95,
                   use_bf16_matmul=False, chunk_cap=32):
    """inputs: (B, state_shape) float32; wb_slab from pack_params().
    Returns ([value, action], (mem1, mem2, mem_act, mem_crit))."""
    B, S = inputs.shape
    H, A, in_pad = dims["hidden"], dims["action"], dims["in_pad"]
    assert S == dims["state"]
    NH = 1 + A
    COLS = _round_up(in_pad + 2 * H + NH, 128)
    T = B                                       # len(inputs) in the PyTorch loop
    beta_c = float(min(max(beta, 0.0), 1.0))    # snntorch clamps beta to [0, 1]
    chunk = max(1, min(T, chunk_cap))

    f32 = jnp.float32
    # one concatenate (instead of a chain of .at[].set) to build the state slab; the output
    # slab keeps the same column layout, so it could be fed straight back (only x changes).
    xmem = jnp.concatenate(
        [inputs.astype(f32),
         jnp.zeros((B, in_pad - S), f32),
         mems["mem1"].astype(f32),
         mems["mem2"].astype(f32),
         mems["mem_crit"].astype(f32),
         mems["mem_act"].astype(f32),
         jnp.zeros((B, COLS - (in_pad + 2 * H + NH)), f32)], axis=1)

    kernel = functools.partial(
        snn_ac_kernel,
        num_steps=T, beta=beta_c, in_pad=in_pad, hidden=H, action=A,
        chunk=chunk, use_bf16_matmul=use_bf16_matmul)

    vmem = pl.BlockSpec(memory_space=pltpu.MemorySpace.VMEM)
    out = pl.pallas_call(
        kernel,
        out_shape=jax.ShapeDtypeStruct((B, COLS), f32),
        in_specs=[vmem, vmem],
        out_specs=vmem,
    )(xmem, wb_slab)

    value = out[:, 0:1]
    action = out[:, 1:NH]
    mem1 = out[:, in_pad:in_pad + H]
    mem2 = out[:, in_pad + H:in_pad + 2 * H]
    mem_crit = out[:, in_pad + 2 * H:in_pad + 2 * H + 1]
    mem_act = out[:, in_pad + 2 * H + 1:in_pad + 2 * H + NH]
    return [value, action], (mem1, mem2, mem_act, mem_crit)


def snn_ac_reference(inputs, params, mems, *, beta=0.95):
    """Pure-JAX reference of the PyTorch forward (f32 everywhere)."""
    beta_c = float(min(max(beta, 0.0), 1.0))

    def lif(cur, mem):
        reset = (mem > 1.0).astype(jnp.float32)
        mem_n = beta_c * mem + cur - reset * 1.0
        spk = (mem_n > 1.0).astype(jnp.float32)
        return spk, mem_n

    x = inputs.astype(jnp.float32)
    mem1, mem2 = mems["mem1"], mems["mem2"]
    spk2 = jnp.zeros_like(mem2)
    for _ in range(inputs.shape[0]):
        spk1, mem1 = lif(x @ params["w1"] + params["b1"], mem1)
        spk2, mem2 = lif(spk1 @ params["w2"] + params["b2"], mem2)
    value, mem_crit = lif(spk2 @ params["wc"] + params["bc"], mems["mem_crit"])
    action, mem_act = lif(spk2 @ params["wa"] + params["ba"], mems["mem_act"])
    return [value, action], (mem1, mem2, mem_act, mem_crit)


def init_params(key, state_shape, hidden, action_shape):
    """Deterministic PyTorch-Linear-style init: U(-1/sqrt(fan_in), 1/sqrt(fan_in)).
    Weights are stored as (in, out) — transposed vs torch's (out, in)."""
    ks = jax.random.split(key, 8)

    def lin(kw, kb, fan_in, fan_out):
        bound = 1.0 / jnp.sqrt(jnp.float32(fan_in))
        w = jax.random.uniform(kw, (fan_in, fan_out), jnp.float32, -bound, bound)
        b = jax.random.uniform(kb, (1, fan_out), jnp.float32, -bound, bound)
        return w, b

    w1, b1 = lin(ks[0], ks[1], state_shape, hidden)
    w2, b2 = lin(ks[2], ks[3], hidden, hidden)
    wc, bc = lin(ks[4], ks[5], hidden, 1)
    wa, ba = lin(ks[6], ks[7], hidden, action_shape)
    return {"w1": w1, "b1": b1, "w2": w2, "b2": b2,
            "wc": wc, "bc": bc, "wa": wa, "ba": ba}


if __name__ == "__main__":
    B = 8            # batch == number of loop iterations (len(inputs))
    STATE = 16       # state_shape
    HIDDEN = 32      # snn_hidden_size
    ACTION = 4       # action_shape

    key = jax.random.PRNGKey(0)
    k_in, k_p, _ = jax.random.split(key, 3)

    inputs = jax.random.normal(k_in, (B, STATE), jnp.float32) * 2.0
    params = init_params(k_p, STATE, HIDDEN, ACTION)

    # pack weights + biases ONCE (hoisted out of the per-call forward).
    wb_slab, dims = pack_params(params)

    # initial membrane potentials (as would come from SNNStates); init_leaky() -> zeros
    mems = {
        "mem1": jnp.zeros((B, HIDDEN), jnp.float32),
        "mem2": jnp.zeros((B, HIDDEN), jnp.float32),
        "mem_act": jnp.zeros((B, ACTION), jnp.float32),
        "mem_crit": jnp.zeros((B, 1), jnp.float32),
    }

    fwd = jax.jit(functools.partial(snn_ac_forward, dims=dims, beta=0.95))
    (value, action), new_mems = fwd(inputs, wb_slab, mems)
    jax.block_until_ready((value, action, new_mems))

    assert value.shape == (B, 1) and action.shape == (B, ACTION)
    assert new_mems[0].shape == (B, HIDDEN) and new_mems[1].shape == (B, HIDDEN)
    assert new_mems[2].shape == (B, ACTION) and new_mems[3].shape == (B, 1)

    # correctness check against a pure-JAX f32 reference
    (v_ref, a_ref), m_ref = snn_ac_reference(inputs, params, mems, beta=0.95)
    for got, ref in [(value, v_ref), (action, a_ref),
                     (new_mems[0], m_ref[0]), (new_mems[1], m_ref[1]),
                     (new_mems[2], m_ref[2]), (new_mems[3], m_ref[3])]:
        assert jnp.allclose(got, ref, atol=1e-3, rtol=1e-3), "mismatch vs reference"

    print("KERNEL_OK")
</pallas_src>

<mosaic_0001>
module attributes {stable_mosaic.version = 11 : i64} {
  func.func @snn_ac_kernel(%arg0: memref<8x128xf32, #tpu.memory_space<vmem>>, %arg1: memref<40x128xf32, #tpu.memory_space<vmem>>, %arg2: memref<8x128xf32, #tpu.memory_space<vmem>>) attributes {dimension_semantics = [], scalar_prefetch = 0 : i64, scratch_operands = 0 : i64, tpu.core_type = #tpu.core_type<tc>} {
    %c0 = arith.constant 0 : index
    %c0_0 = arith.constant 0 : index
    %0 = vector.load %arg0[%c0, %c0_0] : memref<8x128xf32, #tpu.memory_space<vmem>>, vector<8x128xf32>
    %1 = vector.extract_strided_slice %0 {offsets = [0, 0], sizes = [8, 32], strides = [1, 1]} : vector<8x128xf32> to vector<8x32xf32>
    %2 = vector.extract_strided_slice %0 {offsets = [0, 32], sizes = [8, 32], strides = [1, 1]} : vector<8x128xf32> to vector<8x32xf32>
    %3 = vector.extract_strided_slice %0 {offsets = [0, 64], sizes = [8, 32], strides = [1, 1]} : vector<8x128xf32> to vector<8x32xf32>
    %4 = vector.extract_strided_slice %0 {offsets = [0, 96], sizes = [8, 5], strides = [1, 1]} : vector<8x128xf32> to vector<8x5xf32>
    %c0_1 = arith.constant 0 : index
    %c0_2 = arith.constant 0 : index
    %5 = vector.load %arg1[%c0_1, %c0_2] : memref<40x128xf32, #tpu.memory_space<vmem>>, vector<40x128xf32>
    %6 = vector.extract_strided_slice %5 {offsets = [0, 0], sizes = [32, 32], strides = [1, 1]} : vector<40x128xf32> to vector<32x32xf32>
    %7 = vector.extract_strided_slice %5 {offsets = [0, 32], sizes = [32, 32], strides = [1, 1]} : vector<40x128xf32> to vector<32x32xf32>
    %8 = vector.extract_strided_slice %5 {offsets = [0, 64], sizes = [32, 5], strides = [1, 1]} : vector<40x128xf32> to vector<32x5xf32>
    %9 = vector.extract_strided_slice %5 {offsets = [32, 0], sizes = [1, 128], strides = [1, 1]} : vector<40x128xf32> to vector<1x128xf32>
    %10 = vector.extract_strided_slice %9 {offsets = [0, 0], sizes = [1, 32], strides = [1, 1]} : vector<1x128xf32> to vector<1x32xf32>
    %11 = vector.shape_cast %10 : vector<1x32xf32> to vector<1x32xf32>
    %12 = vector.broadcast %11 : vector<1x32xf32> to vector<8x32xf32>
    %13 = vector.extract_strided_slice %9 {offsets = [0, 32], sizes = [1, 32], strides = [1, 1]} : vector<1x128xf32> to vector<1x32xf32>
    %14 = vector.extract_strided_slice %9 {offsets = [0, 64], sizes = [1, 5], strides = [1, 1]} : vector<1x128xf32> to vector<1x5xf32>
    %15 = vector.shape_cast %14 : vector<1x5xf32> to vector<1x5xf32>
    %16 = vector.broadcast %15 : vector<1x5xf32> to vector<8x5xf32>
    %cst = arith.constant dense<0.000000e+00> : vector<8x32xf32>
    %17 = tpu.matmul %1, %6, %cst {dimension_numbers = #tpu.dot_dimension_numbers<[1], [0], [0], [1], [0, 0, 1, 1], [], []>} : vector<8x32xf32>, vector<32x32xf32>, vector<8x32xf32> -> vector<8x32xf32>
    %18 = arith.addf %17, %12 : vector<8x32xf32>
    %19 = vector.shape_cast %13 : vector<1x32xf32> to vector<1x32xf32>
    %20 = vector.broadcast %19 : vector<1x32xf32> to vector<64x32xf32>
    %cst_3 = arith.constant 1.000000e+00 : f32
    %21 = vector.broadcast %cst_3 : f32 to vector<8x32xf32>
    %22 = arith.cmpf ogt, %2, %21 : vector<8x32xf32>
    %cst_4 = arith.constant 1.000000e+00 : f32
    %cst_5 = arith.constant 0.000000e+00 : f32
    %23 = vector.broadcast %cst_4 : f32 to vector<8x32xf32>
    %24 = vector.broadcast %cst_5 : f32 to vector<8x32xf32>
    %25 = arith.select %22, %23, %24 : vector<8x32xi1>, vector<8x32xf32>
    %cst_6 = arith.constant 0.949999988 : f32
    %26 = vector.broadcast %cst_6 : f32 to vector<8x32xf32>
    %27 = arith.mulf %26, %2 : vector<8x32xf32>
    %28 = arith.addf %27, %18 : vector<8x32xf32>
    %29 = arith.subf %28, %25 : vector<8x32xf32>
    %cst_7 = arith.constant 1.000000e+00 : f32
    %30 = vector.broadcast %cst_7 : f32 to vector<8x32xf32>
    %31 = arith.cmpf ogt, %29, %30 : vector<8x32xf32>
    %32 = arith.extui %31 : vector<8x32xi1> to vector<8x32xi32>
    %33 = arith.sitofp %32 : vector<8x32xi32> to vector<8x32xf32>
    %cst_8 = arith.constant 1.000000e+00 : f32
    %34 = vector.broadcast %cst_8 : f32 to vector<8x32xf32>
    %35 = arith.cmpf ogt, %29, %34 : vector<8x32xf32>
    %cst_9 = arith.constant 1.000000e+00 : f32
    %cst_10 = arith.constant 0.000000e+00 : f32
    %36 = vector.broadcast %cst_9 : f32 to vector<8x32xf32>
    %37 = vector.broadcast %cst_10 : f32 to vector<8x32xf32>
    %38 = arith.select %35, %36, %37 : vector<8x32xi1>, vector<8x32xf32>
    %cst_11 = arith.constant 0.949999988 : f32
    %39 = vector.broadcast %cst_11 : f32 to vector<8x32xf32>
    %40 = arith.mulf %39, %29 : vector<8x32xf32>
    %41 = arith.addf %40, %18 : vector<8x32xf32>
    %42 = arith.subf %41, %38 : vector<8x32xf32>
    %cst_12 = arith.constant 1.000000e+00 : f32
    %43 = vector.broadcast %cst_12 : f32 to vector<8x32xf32>
    %44 = arith.cmpf ogt, %42, %43 : vector<8x32xf32>
    %45 = arith.extui %44 : vector<8x32xi1> to vector<8x32xi32>
    %46 = arith.sitofp %45 : vector<8x32xi32> to vector<8x32xf32>
    %cst_13 = arith.constant 1.000000e+00 : f32
    %47 = vector.broadcast %cst_13 : f32 to vector<8x32xf32>
    %48 = arith.cmpf ogt, %42, %47 : vector<8x32xf32>
    %cst_14 = arith.constant 1.000000e+00 : f32
    %cst_15 = arith.constant 0.000000e+00 : f32
    %49 = vector.broadcast %cst_14 : f32 to vector<8x32xf32>
    %50 = vector.broadcast %cst_15 : f32 to vector<8x32xf32>
    %51 = arith.select %48, %49, %50 : vector<8x32xi1>, vector<8x32xf32>
    %cst_16 = arith.constant 0.949999988 : f32
    %52 = vector.broadcast %cst_16 : f32 to vector<8x32xf32>
    %53 = arith.mulf %52, %42 : vector<8x32xf32>
    %54 = arith.addf %53, %18 : vector<8x32xf32>
    %55 = arith.subf %54, %51 : vector<8x32xf32>
    %cst_17 = arith.constant 1.000000e+00 : f32
    %56 = vector.broadcast %cst_17 : f32 to vector<8x32xf32>
    %57 = arith.cmpf ogt, %55, %56 : vector<8x32xf32>
    %58 = arith.extui %57 : vector<8x32xi1> to vector<8x32xi32>
    %59 = arith.sitofp %58 : vector<8x32xi32> to vector<8x32xf32>
    %cst_18 = arith.constant 1.000000e+00 : f32
    %60 = vector.broadcast %cst_18 : f32 to vector<8x32xf32>
    %61 = arith.cmpf ogt, %55, %60 : vector<8x32xf32>
    %cst_19 = arith.constant 1.000000e+00 : f32
    %cst_20 = arith.constant 0.000000e+00 : f32
    %62 = vector.broadcast %cst_19 : f32 to vector<8x32xf32>
    %63 = vector.broadcast %cst_20 : f32 to vector<8x32xf32>
    %64 = arith.select %61, %62, %63 : vector<8x32xi1>, vector<8x32xf32>
    %cst_21 = arith.constant 0.949999988 : f32
    %65 = vector.broadcast %cst_21 : f32 to vector<8x32xf32>
    %66 = arith.mulf %65, %55 : vector<8x32xf32>
    %67 = arith.addf %66, %18 : vector<8x32xf32>
    %68 = arith.subf %67, %64 : vector<8x32xf32>
    %cst_22 = arith.constant 1.000000e+00 : f32
    %69 = vector.broadcast %cst_22 : f32 to vector<8x32xf32>
    %70 = arith.cmpf ogt, %68, %69 : vector<8x32xf32>
    %71 = arith.extui %70 : vector<8x32xi1> to vector<8x32xi32>
    %72 = arith.sitofp %71 : vector<8x32xi32> to vector<8x32xf32>
    %cst_23 = arith.constant 1.000000e+00 : f32
    %73 = vector.broadcast %cst_23 : f32 to vector<8x32xf32>
    %74 = arith.cmpf ogt, %68, %73 : vector<8x32xf32>
    %cst_24 = arith.constant 1.000000e+00 : f32
    %cst_25 = arith.constant 0.000000e+00 : f32
    %75 = vector.broadcast %cst_24 : f32 to vector<8x32xf32>
    %76 = vector.broadcast %cst_25 : f32 to vector<8x32xf32>
    %77 = arith.select %74, %75, %76 : vector<8x32xi1>, vector<8x32xf32>
    %cst_26 = arith.constant 0.949999988 : f32
    %78 = vector.broadcast %cst_26 : f32 to vector<8x32xf32>
    %79 = arith.mulf %78, %68 : vector<8x32xf32>
    %80 = arith.addf %79, %18 : vector<8x32xf32>
    %81 = arith.subf %80, %77 : vector<8x32xf32>
    %cst_27 = arith.constant 1.000000e+00 : f32
    %82 = vector.broadcast %cst_27 : f32 to vector<8x32xf32>
    %83 = arith.cmpf ogt, %81, %82 : vector<8x32xf32>
    %84 = arith.extui %83 : vector<8x32xi1> to vector<8x32xi32>
    %85 = arith.sitofp %84 : vector<8x32xi32> to vector<8x32xf32>
    %cst_28 = arith.constant 1.000000e+00 : f32
    %86 = vector.broadcast %cst_28 : f32 to vector<8x32xf32>
    %87 = arith.cmpf ogt, %81, %86 : vector<8x32xf32>
    %cst_29 = arith.constant 1.000000e+00 : f32
    %cst_30 = arith.constant 0.000000e+00 : f32
    %88 = vector.broadcast %cst_29 : f32 to vector<8x32xf32>
    %89 = vector.broadcast %cst_30 : f32 to vector<8x32xf32>
    %90 = arith.select %87, %88, %89 : vector<8x32xi1>, vector<8x32xf32>
    %cst_31 = arith.constant 0.949999988 : f32
    %91 = vector.broadcast %cst_31 : f32 to vector<8x32xf32>
    %92 = arith.mulf %91, %81 : vector<8x32xf32>
    %93 = arith.addf %92, %18 : vector<8x32xf32>
    %94 = arith.subf %93, %90 : vector<8x32xf32>
    %cst_32 = arith.constant 1.000000e+00 : f32
    %95 = vector.broadcast %cst_32 : f32 to vector<8x32xf32>
    %96 = arith.cmpf ogt, %94, %95 : vector<8x32xf32>
    %97 = arith.extui %96 : vector<8x32xi1> to vector<8x32xi32>
    %98 = arith.sitofp %97 : vector<8x32xi32> to vector<8x32xf32>
    %cst_33 = arith.constant 1.000000e+00 : f32
    %99 = vector.broadcast %cst_33 : f32 to vector<8x32xf32>
    %100 = arith.cmpf ogt, %94, %99 : vector<8x32xf32>
    %cst_34 = arith.constant 1.000000e+00 : f32
    %cst_35 = arith.constant 0.000000e+00 : f32
    %101 = vector.broadcast %cst_34 : f32 to vector<8x32xf32>
    %102 = vector.broadcast %cst_35 : f32 to vector<8x32xf32>
    %103 = arith.select %100, %101, %102 : vector<8x32xi1>, vector<8x32xf32>
    %cst_36 = arith.constant 0.949999988 : f32
    %104 = vector.broadcast %cst_36 : f32 to vector<8x32xf32>
    %105 = arith.mulf %104, %94 : vector<8x32xf32>
    %106 = arith.addf %105, %18 : vector<8x32xf32>
    %107 = arith.subf %106, %103 : vector<8x32xf32>
    %cst_37 = arith.constant 1.000000e+00 : f32
    %108 = vector.broadcast %cst_37 : f32 to vector<8x32xf32>
    %109 = arith.cmpf ogt, %107, %108 : vector<8x32xf32>
    %110 = arith.extui %109 : vector<8x32xi1> to vector<8x32xi32>
    %111 = arith.sitofp %110 : vector<8x32xi32> to vector<8x32xf32>
    %cst_38 = arith.constant 1.000000e+00 : f32
    %112 = vector.broadcast %cst_38 : f32 to vector<8x32xf32>
    %113 = arith.cmpf ogt, %107, %112 : vector<8x32xf32>
    %cst_39 = arith.constant 1.000000e+00 : f32
    %cst_40 = arith.constant 0.000000e+00 : f32
    %114 = vector.broadcast %cst_39 : f32 to vector<8x32xf32>
    %115 = vector.broadcast %cst_40 : f32 to vector<8x32xf32>
    %116 = arith.select %113, %114, %115 : vector<8x32xi1>, vector<8x32xf32>
    %cst_41 = arith.constant 0.949999988 : f32
    %117 = vector.broadcast %cst_41 : f32 to vector<8x32xf32>
    %118 = arith.mulf %117, %107 : vector<8x32xf32>
    %119 = arith.addf %118, %18 : vector<8x32xf32>
    %120 = arith.subf %119, %116 : vector<8x32xf32>
    %cst_42 = arith.constant 1.000000e+00 : f32
    %121 = vector.broadcast %cst_42 : f32 to vector<8x32xf32>
    %122 = arith.cmpf ogt, %120, %121 : vector<8x32xf32>
    %123 = arith.extui %122 : vector<8x32xi1> to vector<8x32xi32>
    %124 = arith.sitofp %123 : vector<8x32xi32> to vector<8x32xf32>
    %125 = tpu.concatenate %33, %46, %59, %72, %85, %98, %111, %124 in 0 : vector<8x32xf32>, vector<8x32xf32>, vector<8x32xf32>, vector<8x32xf32>, vector<8x32xf32>, vector<8x32xf32>, vector<8x32xf32>, vector<8x32xf32> -> vector<64x32xf32>
    %cst_43 = arith.constant dense<0.000000e+00> : vector<64x32xf32>
    %126 = tpu.matmul %125, %7, %cst_43 {dimension_numbers = #tpu.dot_dimension_numbers<[1], [0], [0], [1], [0, 0, 1, 1], [], []>} : vector<64x32xf32>, vector<32x32xf32>, vector<64x32xf32> -> vector<64x32xf32>
    %127 = arith.addf %126, %20 : vector<64x32xf32>
    %128 = vector.extract_strided_slice %127 {offsets = [0, 0], sizes = [8, 32], strides = [1, 1]} : vector<64x32xf32> to vector<8x32xf32>
    %cst_44 = arith.constant 1.000000e+00 : f32
    %129 = vector.broadcast %cst_44 : f32 to vector<8x32xf32>
    %130 = arith.cmpf ogt, %3, %129 : vector<8x32xf32>
    %cst_45 = arith.constant 1.000000e+00 : f32
    %cst_46 = arith.constant 0.000000e+00 : f32
    %131 = vector.broadcast %cst_45 : f32 to vector<8x32xf32>
    %132 = vector.broadcast %cst_46 : f32 to vector<8x32xf32>
    %133 = arith.select %130, %131, %132 : vector<8x32xi1>, vector<8x32xf32>
    %cst_47 = arith.constant 0.949999988 : f32
    %134 = vector.broadcast %cst_47 : f32 to vector<8x32xf32>
    %135 = arith.mulf %134, %3 : vector<8x32xf32>
    %136 = arith.addf %135, %128 : vector<8x32xf32>
    %137 = arith.subf %136, %133 : vector<8x32xf32>
    %138 = vector.extract_strided_slice %127 {offsets = [8, 0], sizes = [8, 32], strides = [1, 1]} : vector<64x32xf32> to vector<8x32xf32>
    %cst_48 = arith.constant 1.000000e+00 : f32
    %139 = vector.broadcast %cst_48 : f32 to vector<8x32xf32>
    %140 = arith.cmpf ogt, %137, %139 : vector<8x32xf32>
    %cst_49 = arith.constant 1.000000e+00 : f32
    %cst_50 = arith.constant 0.000000e+00 : f32
    %141 = vector.broadcast %cst_49 : f32 to vector<8x32xf32>
    %142 = vector.broadcast %cst_50 : f32 to vector<8x32xf32>
    %143 = arith.select %140, %141, %142 : vector<8x32xi1>, vector<8x32xf32>
    %cst_51 = arith.constant 0.949999988 : f32
    %144 = vector.broadcast %cst_51 : f32 to vector<8x32xf32>
    %145 = arith.mulf %144, %137 : vector<8x32xf32>
    %146 = arith.addf %145, %138 : vector<8x32xf32>
    %147 = arith.subf %146, %143 : vector<8x32xf32>
    %148 = vector.extract_strided_slice %127 {offsets = [16, 0], sizes = [8, 32], strides = [1, 1]} : vector<64x32xf32> to vector<8x32xf32>
    %cst_52 = arith.constant 1.000000e+00 : f32
    %149 = vector.broadcast %cst_52 : f32 to vector<8x32xf32>
    %150 = arith.cmpf ogt, %147, %149 : vector<8x32xf32>
    %cst_53 = arith.constant 1.000000e+00 : f32
    %cst_54 = arith.constant 0.000000e+00 : f32
    %151 = vector.broadcast %cst_53 : f32 to vector<8x32xf32>
    %152 = vector.broadcast %cst_54 : f32 to vector<8x32xf32>
    %153 = arith.select %150, %151, %152 : vector<8x32xi1>, vector<8x32xf32>
    %cst_55 = arith.constant 0.949999988 : f32
    %154 = vector.broadcast %cst_55 : f32 to vector<8x32xf32>
    %155 = arith.mulf %154, %147 : vector<8x32xf32>
    %156 = arith.addf %155, %148 : vector<8x32xf32>
    %157 = arith.subf %156, %153 : vector<8x32xf32>
    %158 = vector.extract_strided_slice %127 {offsets = [24, 0], sizes = [8, 32], strides = [1, 1]} : vector<64x32xf32> to vector<8x32xf32>
    %cst_56 = arith.constant 1.000000e+00 : f32
    %159 = vector.broadcast %cst_56 : f32 to vector<8x32xf32>
    %160 = arith.cmpf ogt, %157, %159 : vector<8x32xf32>
    %cst_57 = arith.constant 1.000000e+00 : f32
    %cst_58 = arith.constant 0.000000e+00 : f32
    %161 = vector.broadcast %cst_57 : f32 to vector<8x32xf32>
    %162 = vector.broadcast %cst_58 : f32 to vector<8x32xf32>
    %163 = arith.select %160, %161, %162 : vector<8x32xi1>, vector<8x32xf32>
    %cst_59 = arith.constant 0.949999988 : f32
    %164 = vector.broadcast %cst_59 : f32 to vector<8x32xf32>
    %165 = arith.mulf %164, %157 : vector<8x32xf32>
    %166 = arith.addf %165, %158 : vector<8x32xf32>
    %167 = arith.subf %166, %163 : vector<8x32xf32>
    %168 = vector.extract_strided_slice %127 {offsets = [32, 0], sizes = [8, 32], strides = [1, 1]} : vector<64x32xf32> to vector<8x32xf32>
    %cst_60 = arith.constant 1.000000e+00 : f32
    %169 = vector.broadcast %cst_60 : f32 to vector<8x32xf32>
    %170 = arith.cmpf ogt, %167, %169 : vector<8x32xf32>
    %cst_61 = arith.constant 1.000000e+00 : f32
    %cst_62 = arith.constant 0.000000e+00 : f32
    %171 = vector.broadcast %cst_61 : f32 to vector<8x32xf32>
    %172 = vector.broadcast %cst_62 : f32 to vector<8x32xf32>
    %173 = arith.select %170, %171, %172 : vector<8x32xi1>, vector<8x32xf32>
    %cst_63 = arith.constant 0.949999988 : f32
    %174 = vector.broadcast %cst_63 : f32 to vector<8x32xf32>
    %175 = arith.mulf %174, %167 : vector<8x32xf32>
    %176 = arith.addf %175, %168 : vector<8x32xf32>
    %177 = arith.subf %176, %173 : vector<8x32xf32>
    %178 = vector.extract_strided_slice %127 {offsets = [40, 0], sizes = [8, 32], strides = [1, 1]} : vector<64x32xf32> to vector<8x32xf32>
    %cst_64 = arith.constant 1.000000e+00 : f32
    %179 = vector.broadcast %cst_64 : f32 to vector<8x32xf32>
    %180 = arith.cmpf ogt, %177, %179 : vector<8x32xf32>
    %cst_65 = arith.constant 1.000000e+00 : f32
    %cst_66 = arith.constant 0.000000e+00 : f32
    %181 = vector.broadcast %cst_65 : f32 to vector<8x32xf32>
    %182 = vector.broadcast %cst_66 : f32 to vector<8x32xf32>
    %183 = arith.select %180, %181, %182 : vector<8x32xi1>, vector<8x32xf32>
    %cst_67 = arith.constant 0.949999988 : f32
    %184 = vector.broadcast %cst_67 : f32 to vector<8x32xf32>
    %185 = arith.mulf %184, %177 : vector<8x32xf32>
    %186 = arith.addf %185, %178 : vector<8x32xf32>
    %187 = arith.subf %186, %183 : vector<8x32xf32>
    %188 = vector.extract_strided_slice %127 {offsets = [48, 0], sizes = [8, 32], strides = [1, 1]} : vector<64x32xf32> to vector<8x32xf32>
    %cst_68 = arith.constant 1.000000e+00 : f32
    %189 = vector.broadcast %cst_68 : f32 to vector<8x32xf32>
    %190 = arith.cmpf ogt, %187, %189 : vector<8x32xf32>
    %cst_69 = arith.constant 1.000000e+00 : f32
    %cst_70 = arith.constant 0.000000e+00 : f32
    %191 = vector.broadcast %cst_69 : f32 to vector<8x32xf32>
    %192 = vector.broadcast %cst_70 : f32 to vector<8x32xf32>
    %193 = arith.select %190, %191, %192 : vector<8x32xi1>, vector<8x32xf32>
    %cst_71 = arith.constant 0.949999988 : f32
    %194 = vector.broadcast %cst_71 : f32 to vector<8x32xf32>
    %195 = arith.mulf %194, %187 : vector<8x32xf32>
    %196 = arith.addf %195, %188 : vector<8x32xf32>
    %197 = arith.subf %196, %193 : vector<8x32xf32>
    %198 = vector.extract_strided_slice %127 {offsets = [56, 0], sizes = [8, 32], strides = [1, 1]} : vector<64x32xf32> to vector<8x32xf32>
    %cst_72 = arith.constant 1.000000e+00 : f32
    %199 = vector.broadcast %cst_72 : f32 to vector<8x32xf32>
    %200 = arith.cmpf ogt, %197, %199 : vector<8x32xf32>
    %cst_73 = arith.constant 1.000000e+00 : f32
    %cst_74 = arith.constant 0.000000e+00 : f32
    %201 = vector.broadcast %cst_73 : f32 to vector<8x32xf32>
    %202 = vector.broadcast %cst_74 : f32 to vector<8x32xf32>
    %203 = arith.select %200, %201, %202 : vector<8x32xi1>, vector<8x32xf32>
    %cst_75 = arith.constant 0.949999988 : f32
    %204 = vector.broadcast %cst_75 : f32 to vector<8x32xf32>
    %205 = arith.mulf %204, %197 : vector<8x32xf32>
    %206 = arith.addf %205, %198 : vector<8x32xf32>
    %207 = arith.subf %206, %203 : vector<8x32xf32>
    %cst_76 = arith.constant 1.000000e+00 : f32
    %208 = vector.broadcast %cst_76 : f32 to vector<8x32xf32>
    %209 = arith.cmpf ogt, %207, %208 : vector<8x32xf32>
    %210 = arith.extui %209 : vector<8x32xi1> to vector<8x32xi32>
    %211 = arith.sitofp %210 : vector<8x32xi32> to vector<8x32xf32>
    %cst_77 = arith.constant dense<0.000000e+00> : vector<8x5xf32>
    %212 = tpu.matmul %211, %8, %cst_77 {dimension_numbers = #tpu.dot_dimension_numbers<[1], [0], [0], [1], [0, 0, 1, 1], [], []>} : vector<8x32xf32>, vector<32x5xf32>, vector<8x5xf32> -> vector<8x5xf32>
    %213 = arith.addf %212, %16 : vector<8x5xf32>
    %cst_78 = arith.constant 1.000000e+00 : f32
    %214 = vector.broadcast %cst_78 : f32 to vector<8x5xf32>
    %215 = arith.cmpf ogt, %4, %214 : vector<8x5xf32>
    %cst_79 = arith.constant 1.000000e+00 : f32
    %cst_80 = arith.constant 0.000000e+00 : f32
    %216 = vector.broadcast %cst_79 : f32 to vector<8x5xf32>
    %217 = vector.broadcast %cst_80 : f32 to vector<8x5xf32>
    %218 = arith.select %215, %216, %217 : vector<8x5xi1>, vector<8x5xf32>
    %cst_81 = arith.constant 0.949999988 : f32
    %219 = vector.broadcast %cst_81 : f32 to vector<8x5xf32>
    %220 = arith.mulf %219, %4 : vector<8x5xf32>
    %221 = arith.addf %220, %213 : vector<8x5xf32>
    %222 = arith.subf %221, %218 : vector<8x5xf32>
    %cst_82 = arith.constant 1.000000e+00 : f32
    %223 = vector.broadcast %cst_82 : f32 to vector<8x5xf32>
    %224 = arith.cmpf ogt, %222, %223 : vector<8x5xf32>
    %225 = arith.extui %224 : vector<8x5xi1> to vector<8x5xi32>
    %226 = arith.sitofp %225 : vector<8x5xi32> to vector<8x5xf32>
    %c0_83 = arith.constant 0 : index
    %c0_84 = arith.constant 0 : index
    %227 = vector.load %arg2[%c0_83, %c0_84] : memref<8x128xf32, #tpu.memory_space<vmem>>, vector<8x5xf32>
    tpu.vector_store %arg2[%c0_83, %c0_84], %226 {strides = array<i32>} : memref<8x128xf32, #tpu.memory_space<vmem>>, vector<8x5xf32>,
    %cst_85 = arith.constant 0.000000e+00 : f32
    %228 = vector.broadcast %cst_85 : f32 to vector<8x27xf32>
    %c0_86 = arith.constant 0 : index
    %c5 = arith.constant 5 : index
    %229 = vector.load %arg2[%c0_86, %c5] : memref<8x128xf32, #tpu.memory_space<vmem>>, vector<8x27xf32>
    tpu.vector_store %arg2[%c0_86, %c5], %228 {strides = array<i32>} : memref<8x128xf32, #tpu.memory_space<vmem>>, vector<8x27xf32>,
    %c0_87 = arith.constant 0 : index
    %c32 = arith.constant 32 : index
    %230 = vector.load %arg2[%c0_87, %c32] : memref<8x128xf32, #tpu.memory_space<vmem>>, vector<8x32xf32>
    tpu.vector_store %arg2[%c0_87, %c32], %120 {strides = array<i32>} : memref<8x128xf32, #tpu.memory_space<vmem>>, vector<8x32xf32>,
    %c0_88 = arith.constant 0 : index
    %c64 = arith.constant 64 : index
    %231 = vector.load %arg2[%c0_88, %c64] : memref<8x128xf32, #tpu.memory_space<vmem>>, vector<8x32xf32>
    tpu.vector_store %arg2[%c0_88, %c64], %207 {strides = array<i32>} : memref<8x128xf32, #tpu.memory_space<vmem>>, vector<8x32xf32>,
    %c0_89 = arith.constant 0 : index
    %c96 = arith.constant 96 : index
    %232 = vector.load %arg2[%c0_89, %c96] : memref<8x128xf32, #tpu.memory_space<vmem>>, vector<8x5xf32>
    tpu.vector_store %arg2[%c0_89, %c96], %222 {strides = array<i32>} : memref<8x128xf32, #tpu.memory_space<vmem>>, vector<8x5xf32>,
    %cst_90 = arith.constant 0.000000e+00 : f32
    %233 = vector.broadcast %cst_90 : f32 to vector<8x27xf32>
    %c0_91 = arith.constant 0 : index
    %c101 = arith.constant 101 : index
    %234 = vector.load %arg2[%c0_91, %c101] : memref<8x128xf32, #tpu.memory_space<vmem>>, vector<8x27xf32>
    tpu.vector_store %arg2[%c0_91, %c101], %233 {strides = array<i32>} : memref<8x128xf32, #tpu.memory_space<vmem>>, vector<8x27xf32>,
    return
  }
}

</mosaic_0001>

<bundles_post_ra>
// kernel: snn_ac_forward.1
= control target key start
LH: loop header
LB: loop body
LE: loop exit
PB: predicated region body
PF: predicated region fallthrough
CT: control target
= control target key end

     0   :  { %vm18_vm0 = vcmask 261120   ;;  %s402_s19 = smov 96   ;;  %v404_v12 = vmov 0.0   ;;  %s539_s1 = inlined_call_operand.vmem [shape: f32[40,128], index: 1, kind: input, shape index: {}]   ;;  %s540_s0 = inlined_call_operand.vmem [shape: f32[8,128], index: 0, kind: input, shape index: {}]   ;;  %s541_s2 = inlined_call_operand.vmem [shape: f32[8,128], index: 2, kind: output, shape index: {}]  }
   0x1   :  { %v15_v0 = vld [vmem:[%s539_s1 + $0x18] sm:$0xff]  ;;  %v14_v1 = vld [vmem:[%s539_s1 + $0x10] sm:$0xff]  ;;  %v13_v2 = vld [vmem:[%s539_s1 + $0x8] sm:$0xff] }
   0x2   :  { %34 = vmatpush.msra.mxu2 %v15_v0  ;;  %v12_v3 = vld [vmem:[%s539_s1] sm:$0xff]  ;;  %v448_v10 = vpack.i.bf16 %v14_v1, %v15_v0 }
   0x3   :  { %v11_v4 = vld [vmem:[%s540_s0] sm:$0xff]  ;;  %v437_v5 = vpack.i.bf16 %v12_v3, %v13_v2  ;;  %s403_s0 = smov 32  }
   0x4   :  { %35 = vmatpush.msra.mxu2 %v14_v1  ;;  %v16_v6 = vld [vmem:[%s539_s1 + $0x20] sm:$0xff]  ;;  %vm42_vm1 = vcmp.gt.f32.partialorder %v11_v4, 1.0  ;;  %v452_v11 = vmul.f32 0.95, %v11_v4  ;;  %s405_s1 = smov 64  }
   0x5   :  { %383 = vrot.lane.b32.xlu1 %v437_v5, %s402_s19  ;;  %v444_v7 = vperm.slane %v16_v6, 0  ;;  %v455_v13 = vsel %vm42_vm1, 1.0, %v404_v12 }
   0x6   :  { %36 = vmatpush.msra.mxu2 %v13_v2 }
   0x8   :  { %37 = vmatpush.msra.mxu2 %v12_v3 }
   0x9   :  { %345 = vmatmul.msk.f32.vlgmr.msra.gmra.mxu2 %vm18_vm0, %v11_v4 }
  0x77   :  { %v384_v27 = vpop.permute.xlu1 %383 }
  0x78   :  { %v385_v33 = vunpack.i.l.bf16 %v384_v27  ;;  %v386_v35 = vunpack.i.h.bf16 %v384_v27 }
  0x8c   :  { %v39_v8 = vpop.f32.mrf.mxu2 }
  0x8d   :  { %v40_v9 = vadd.f32 %v39_v8, %v444_v7 }
  0x8f   :  { %46 = vrot.lane.b32.xlu0 %v40_v9, %s403_s0 }
  0x97   :  { %378 = vrot.lane.b32.xlu0 %v448_v10, %s402_s19 }
 0x101   :  { %v47_v14 = vpop.permute.xlu0 %46 }
 0x102   :  { %v49_v15 = vadd.f32 %v47_v14, %v452_v11 }
 0x104   :  { %v50_v16 = vsub.f32 %v49_v15, %v455_v13 }
 0x106   :  { %vm51_vm2 = vcmp.gt.f32.partialorder %v50_v16, 1.0  ;;  %v55_v17 = vmul.f32 0.95, %v50_v16 }
 0x107   :  { %v346_v18 = vsel %vm51_vm2, 1.0, %v404_v12 }
 0x108   :  { %v56_v19 = vadd.f32 %v55_v17, %v47_v14  ;;  %111 = vrot.lane.b32.xlu1 %v346_v18, %s402_s19 }
 0x109   :  { %v379_v26 = vpop.permute.xlu0 %378 }
 0x10a   :  { %v57_v20 = vsub.f32 %v56_v19, %v346_v18  ;;  %v381_v29 = vunpack.i.h.bf16 %v379_v26  ;;  %v380_v30 = vunpack.i.l.bf16 %v379_v26 }
 0x10c   :  { %v62_v21 = vmul.f32 0.95, %v57_v20  ;;  %vm58_vm3 = vcmp.gt.f32.partialorder %v57_v20, 1.0  ;;  %365 = vmatpush.msra.mxu1 %v380_v30  ;;  %175 = vmatpush.msra.mxu0 %v380_v30 }
 0x10d   :  { %v347_v23 = vsel %vm58_vm3, 1.0, %v404_v12  ;;  %366 = vmatpush.msra.mxu3 %v380_v30 }
 0x10e   :  { %v63_v22 = vadd.f32 %v62_v21, %v47_v14  ;;  %367 = vmatpush.msra.mxu1 %v381_v29  ;;  %176 = vmatpush.msra.mxu0 %v381_v29 }
 0x10f   :  { %368 = vmatpush.msra.mxu3 %v381_v29 }
 0x110   :  { %v64_v24 = vsub.f32 %v63_v22, %v347_v23  ;;  %369 = vmatpush.msra.mxu1 %v385_v33  ;;  %177 = vmatpush.msra.mxu0 %v385_v33 }
 0x111   :  { %370 = vmatpush.msra.mxu3 %v385_v33 }
 0x112   :  { %vm65_vm4 = vcmp.gt.f32.partialorder %v64_v24, 1.0  ;;  %v69_v25 = vmul.f32 0.95, %v64_v24  ;;  %371 = vmatpush.msra.mxu1 %v386_v35  ;;  %178 = vmatpush.msra.mxu0 %v386_v35 }
 0x113   :  { %v348_v28 = vsel %vm65_vm4, 1.0, %v404_v12  ;;  %372 = vmatpush.msra.mxu3 %v386_v35  ;;  %vm329_vm4 = vcmask 39936  }
 0x114   :  { %v70_v31 = vadd.f32 %v69_v25, %v47_v14  ;;  %v387_v32 = vpack.i.bf16 %v348_v28, %v347_v23 }
 0x116   :  { %388 = vrot.lane.b32.xlu2 %v387_v32, %s402_s19  ;;  %v71_v34 = vsub.f32 %v70_v31, %v348_v28 }
 0x118   :  { %v76_v36 = vmul.f32 0.95, %v71_v34  ;;  %vm72_vm5 = vcmp.gt.f32.partialorder %v71_v34, 1.0 }
 0x119   :  { %v349_v38 = vsel %vm72_vm5, 1.0, %v404_v12  ;;  %vm331_vm5 = vcmask 261160  }
 0x11a   :  { %v77_v37 = vadd.f32 %v76_v36, %v47_v14 }
 0x11c   :  { %v78_v39 = vsub.f32 %v77_v37, %v349_v38 }
 0x11e   :  { %117 = vrot.lane.b32.xlu2 %v349_v38, %s402_s19  ;;  %v83_v40 = vmul.f32 0.95, %v78_v39  ;;  %vm79_vm6 = vcmp.gt.f32.partialorder %v78_v39, 1.0 }
 0x11f   :  { %v350_v41 = vsel %vm79_vm6, 1.0, %v404_v12  ;;  %vm333_vm6 = vcmask 523520  }
 0x120   :  { %v84_v42 = vadd.f32 %v83_v40, %v47_v14  ;;  %119 = vrot.lane.b32.xlu1 %v350_v41, %s402_s19 }
 0x122   :  { %v85_v43 = vsub.f32 %v84_v42, %v350_v41 }
 0x124   :  { %v90_v44 = vmul.f32 0.95, %v85_v43  ;;  %vm86_vm7 = vcmp.gt.f32.partialorder %v85_v43, 1.0 }
 0x125   :  { %v351_v45 = vsel %vm86_vm7, 1.0, %v404_v12  ;;  %vm337_vm7 = vcmask 827136  }
 0x126   :  { %v91_v46 = vadd.f32 %v90_v44, %v47_v14  ;;  %121 = vrot.lane.b32.xlu0 %v351_v45, %s402_s19 }
 0x128   :  { %v92_v47 = vsub.f32 %v91_v46, %v351_v45  ;;  %144 = vrot.lane.b32.xlu1 %v444_v7, %s402_s19 }
 0x12a   :  { %v97_v48 = vmul.f32 0.95, %v92_v47  ;;  %vm93_vm8 = vcmp.gt.f32.partialorder %v92_v47, 1.0 }
 0x12b   :  { %v352_v49 = vsel %vm93_vm8, 1.0, %v404_v12  ;;  %vm339_vm8 = vcmask 1048360  }
 0x12c   :  { %v98_v50 = vadd.f32 %v97_v48, %v47_v14  ;;  %123 = vrot.lane.b32.xlu2 %v352_v49, %s402_s19 }
 0x12e   :  { %v474_v51 = vsub.f32 %v98_v50, %v352_v49 }
 0x130   :  { %vm100_vm9 = vcmp.gt.f32.partialorder %v474_v51, 1.0 }
 0x131   :  { %v353_v52 = vsel %vm100_vm9, 1.0, %v404_v12 }
 0x132   :  { %125 = vrot.lane.b32.xlu0 %v353_v52, %s402_s19 }
 0x170   :  { %v389_v53 = vpop.permute.xlu2 %388 }
 0x171   :  { %v391_v54 = vunpack.i.h.bf16 %v389_v53  ;;  %v390_v57 = vunpack.i.l.bf16 %v389_v53 }
 0x173   :  { %356 = vmatmul.msk.f32.vlgmr.msra.gmra.mxu1 %vm18_vm0, %v391_v54 }
 0x178   :  { %v118_v55 = vpop.permute.xlu2 %117 }
 0x17a   :  { %v112_v56 = vpop.permute.xlu1 %111 }
 0x17b   :  { %354 = vmatmul.msk.f32.vlgmr.msra.gmra.mxu0 %vm18_vm0, %v112_v56  ;;  %357 = vmatmul.msk.f32.gmra.mxu1 %vm18_vm0, %v118_v55 }
 0x183   :  { %355 = vmatmul.msk.f32.gmra.mxu0 %vm18_vm0, %v390_v57 }
 0x186   :  { %v124_v60 = vpop.permute.xlu2 %123 }
 0x192   :  { %v120_v58 = vpop.permute.xlu1 %119 }
 0x193   :  { %358 = vmatmul.msk.f32.gmra.mxu1 %vm18_vm0, %v120_v58 }
 0x198   :  { %v122_v59 = vpop.permute.xlu0 %121 }
 0x199   :  { %359 = vmatmul.msk.f32.vlgmr.msra.gmra.mxu3 %vm18_vm0, %v122_v59 }
 0x19a   :  { %v145_v62 = vpop.permute.xlu1 %144 }
 0x1a1   :  { %360 = vmatmul.msk.f32.gmra.mxu3 %vm18_vm0, %v124_v60 }
 0x1a4   :  { %v126_v61 = vpop.permute.xlu0 %125 }
 0x1a9   :  { %361 = vmatmul.msk.f32.gmra.mxu3 %vm18_vm0, %v126_v61 }
 0x1f0   :  { %v186_v63 = vpop.f32.mrf.mxu1 }
 0x1f1   :  { %v187_v0 = vadd.f32 %v186_v63, %v145_v62 }
 0x1f3   :  { %223 = vrot.lane.b32.xlu1 %v187_v0, %s405_s1 }
 0x1f8   :  { %v180_v1 = vpop.f32.mrf.mxu0  ;;  %v189_v3 = vpop.f32.mrf.mxu1 }
 0x1f9   :  { %v181_v2 = vadd.f32 %v180_v1, %v145_v62  ;;  %v190_v6 = vadd.f32 %v189_v3, %v145_v62 }
 0x1fb   :  { %205 = vrot.lane.b32.xlu2 %v181_v2, %s405_s1 }
 0x200   :  { %v183_v4 = vpop.f32.mrf.mxu0 }
 0x201   :  { %v184_v8 = vadd.f32 %v183_v4, %v145_v62 }
 0x203   :  { %214 = vrot.lane.b32.xlu0 %v184_v8, %s405_s1  ;;  %232 = vrot.lane.b32.xlu2 %v190_v6, %s405_s1 }
 0x210   :  { %v192_v9 = vpop.f32.mrf.mxu1 }
 0x211   :  { %v193_v14 = vadd.f32 %v192_v9, %v145_v62 }
 0x213   :  { %241 = vrot.lane.b32.xlu0 %v193_v14, %s405_s1 }
 0x21c   :  { %v195_v15 = vpop.f32.mrf.mxu3 }
 0x21d   :  { %v196_v16 = vadd.f32 %v195_v15, %v145_v62 }
 0x21f   :  { %250 = vrot.lane.b32.xlu1 %v196_v16, %s405_s1 }
 0x224   :  { %v198_v17 = vpop.f32.mrf.mxu3 }
 0x225   :  { %v199_v18 = vadd.f32 %v198_v17, %v145_v62 }
 0x227   :  { %259 = vrot.lane.b32.xlu2 %v199_v18, %s405_s1  ;;  %393 = vrot.lane.b32.xlu1 %v448_v10, %s405_s1 }
 0x22c   :  { %v201_v19 = vpop.f32.mrf.mxu3 }
 0x22d   :  { %v202_v20 = vadd.f32 %v201_v19, %v145_v62 }
 0x22f   :  { %268 = vrot.lane.b32.xlu0 %v202_v20, %s405_s1  ;;  %291 = vrot.lane.b32.xlu1 %v444_v7, %s405_s1 }
 0x230   :  { %398 = vrot.lane.b32.xlu2 %v437_v5, %s405_s1 }
 0x255   :  { %v206_v21 = vpop.permute.xlu2 %205 }
 0x256   :  { %v208_v22 = vadd.f32 %v206_v21, %v452_v11 }
 0x258   :  { %v209_v23 = vsub.f32 %v208_v22, %v455_v13 }
 0x25a   :  { %vm210_vm10 = vcmp.gt.f32.partialorder %v209_v23, 1.0  ;;  %v212_v24 = vmul.f32 0.95, %v209_v23 }
 0x25b   :  { %v211_v27 = vsel %vm210_vm10, 1.0, %v404_v12 }
 0x25d   :  { %v233_v35 = vpop.permute.xlu2 %232 }
 0x265   :  { %v224_v30 = vpop.permute.xlu1 %223 }
 0x275   :  { %v215_v25 = vpop.permute.xlu0 %214 }
 0x276   :  { %v217_v26 = vadd.f32 %v215_v25, %v212_v24 }
 0x278   :  { %v218_v28 = vsub.f32 %v217_v26, %v211_v27 }
 0x27a   :  { %vm219_vm11 = vcmp.gt.f32.partialorder %v218_v28, 1.0  ;;  %v221_v29 = vmul.f32 0.95, %v218_v28 }
 0x27b   :  { %v220_v32 = vsel %vm219_vm11, 1.0, %v404_v12 }
 0x27c   :  { %v226_v31 = vadd.f32 %v224_v30, %v221_v29 }
 0x27e   :  { %v227_v33 = vsub.f32 %v226_v31, %v220_v32 }
 0x280   :  { %vm228_vm12 = vcmp.gt.f32.partialorder %v227_v33, 1.0  ;;  %v230_v34 = vmul.f32 0.95, %v227_v33 }
 0x281   :  { %v229_v37 = vsel %vm228_vm12, 1.0, %v404_v12  ;;  %v260_v48 = vpop.permute.xlu2 %259 }
 0x282   :  { %v235_v36 = vadd.f32 %v233_v35, %v230_v34 }
 0x284   :  { %v236_v38 = vsub.f32 %v235_v36, %v229_v37 }
 0x285   :  { %v242_v40 = vpop.permute.xlu0 %241 }
 0x286   :  { %v239_v39 = vmul.f32 0.95, %v236_v38  ;;  %vm237_vm13 = vcmp.gt.f32.partialorder %v236_v38, 1.0 }
 0x287   :  { %v238_v41 = vsel %vm237_vm13, 1.0, %v404_v12 }
 0x288   :  { %v244_v10 = vadd.f32 %v242_v40, %v239_v39 }
 0x28a   :  { %v245_v42 = vsub.f32 %v244_v10, %v238_v41  ;;  %v399_v59 = vpop.permute.xlu2 %398 }
 0x28b   :  { %v400_v62 = vunpack.i.l.bf16 %v399_v59  ;;  %v401_v63 = vunpack.i.h.bf16 %v399_v59 }
 0x28c   :  { %vm246_vm14 = vcmp.gt.f32.partialorder %v245_v42, 1.0  ;;  %v248_v43 = vmul.f32 0.95, %v245_v42 }
 0x28d   :  { %v247_v7 = vsel %vm246_vm14, 1.0, %v404_v12 }
 0x291   :  { %v251_v44 = vpop.permute.xlu1 %250 }
 0x292   :  { %v253_v45 = vadd.f32 %v251_v44, %v248_v43 }
 0x294   :  { %v254_v46 = vsub.f32 %v253_v45, %v247_v7 }
 0x296   :  { %v257_v47 = vmul.f32 0.95, %v254_v46  ;;  %vm255_vm15 = vcmp.gt.f32.partialorder %v254_v46, 1.0 }
 0x297   :  { %v256_v50 = vsel %vm255_vm15, 1.0, %v404_v12 }
 0x298   :  { %v262_v49 = vadd.f32 %v260_v48, %v257_v47 }
 0x299   :  { %v394_v58 = vpop.permute.xlu1 %393 }
 0x29a   :  { %v263_v52 = vsub.f32 %v262_v49, %v256_v50  ;;  %v395_v60 = vunpack.i.l.bf16 %v394_v58  ;;  %v396_v61 = vunpack.i.h.bf16 %v394_v58 }
 0x29c   :  { %vm264_vm1 = vcmp.gt.f32.partialorder %v263_v52, 1.0  ;;  %v266_v53 = vmul.f32 0.95, %v263_v52  ;;  %308 = vmatpush.msrb.mxu2 %v395_v60 }
 0x29d   :  { %v265_v55 = vsel %vm264_vm1, 1.0, %v404_v12 }
 0x29e   :  { %309 = vmatpush.msrb.mxu2 %v396_v61 }
 0x2a0   :  { %310 = vmatpush.msrb.mxu2 %v400_v62 }
 0x2a1   :  { %v269_v5 = vpop.permute.xlu0 %268  ;;  %v292_v1 = vpop.permute.xlu1 %291 }
 0x2a2   :  { %v271_v54 = vadd.f32 %v269_v5, %v266_v53  ;;  %311 = vmatpush.msrb.mxu2 %v401_v63 }
 0x2a4   :  { %v272_v56 = vsub.f32 %v271_v54, %v265_v55 }
 0x2a6   :  { %vm273_vm2 = vcmp.gt.f32.partialorder %v272_v56, 1.0 }
 0x2a7   :  { %v362_v57 = vsel %vm273_vm2, 1.0, %v404_v12 }
 0x2a8   :  { %277 = vrot.lane.b32.xlu0 %v362_v57, %s405_s1 }
 0x31a   :  { %v278_v0 = vpop.permute.xlu0 %277 }
 0x31b   :  { %363 = vmatmul.msk.f32.vlgmr.msrb.gmra.mxu2 %vm18_vm0, %v278_v0  ;;  %vm335_vm0 = vcmask 785920  }
 0x39e   :  { %v313_v2 = vpop.f32.mrf.mxu2 }
 0x39f   :  { %v314_v3 = vadd.f32 %v313_v2, %v292_v1 }
 0x3a1   :  { %317 = vrot.lane.b32.xlu2 %v314_v3, %s402_s19 }
 0x3fb   :  { %v318_v4 = vpop.permute.xlu2 %317 }
 0x3fc   :  { %v320_v6 = vadd.f32 %v318_v4, %v452_v11 }
 0x3fe   :  { %v321_v8 = vsub.f32 %v320_v6, %v455_v13 }
 0x400   :  { %vm322_vm3 = vcmp.gt.f32.partialorder %v321_v8, 1.0 }
 0x401   :  { %v364_v9 = vsel %vm322_vm3, 1.0, %v404_v12 }
 0x402   :  { %326 = vrot.lane.b32.xlu0 %v364_v9, %s403_s0 }
 0x474   :  { %v327_v14 = vpop.permute.xlu0 %326 }
 0x475   :  { %330 = vst.msk [vmem:[%s541_s2] sm:$0xff] %vm329_vm4, %v327_v14 }
 0x476   :  { %332 = vst.msk [vmem:[%s541_s2] sm:$0xff] %vm331_vm5, %v404_v12 }
 0x477   :  { %334 = vst.msk [vmem:[%s541_s2] sm:$0xff] %vm333_vm6, %v474_v51 }
 0x478   :  { %336 = vst.msk [vmem:[%s541_s2] sm:$0xff] %vm335_vm0, %v272_v56 }
 0x479   :  { %338 = vst.msk [vmem:[%s541_s2] sm:$0xff] %vm337_vm7, %v321_v8 }
 0x47a   :  { %340 = vst.msk [vmem:[%s541_s2] sm:$0xff] %vm339_vm8, %v404_v12 }

</bundles_post_ra>
